<compile_context>
chip_gen: v7x
topology: tpu7x:2x2x1
jax: 0.10.0
libtpu: 0.0.40
codegen_flags: <defaults>
</compile_context>

<pallas_src>
import math
import jax
import jax.numpy as jnp
from jax.experimental import pallas as pl
from jax.experimental.pallas import tpu as pltpu


# --------------------------------------------------------------------------------------
# Module hyper-parameter rule (same as SE._round_width in the PyTorch module).
# --------------------------------------------------------------------------------------
def _round_width(width, multiplier, min_width=8, divisor=8):
    if not multiplier:
        return width
    width *= multiplier
    min_width = min_width or divisor
    width_out = max(min_width, int(width + divisor / 2) // divisor * divisor)
    if width_out < 0.9 * width:
        width_out += divisor
    return int(width_out)


def _act(h, relu_act):
    if relu_act:
        return jnp.maximum(h, 0.0)
    return h * jax.nn.sigmoid(h)  # Swish


# --------------------------------------------------------------------------------------
# Path A: fused kernel. Block = (NB, C, S): pool + tiny FCs + excite in one HBM pass.
# --------------------------------------------------------------------------------------
def _se_fused_kernel(relu_act, inv_s):
    def kernel(x_ref, w1t_ref, b1_ref, w2t_ref, b2_ref, o_ref):
        x = x_ref[...]                                                           # (NB, C, S)
        # squeeze: f32 accumulation (XLU lane reduce), no full-block f32 materialization
        pooled = jnp.sum(x, axis=-1, dtype=jnp.float32) * inv_s                  # (NB, C)
        # tiny FCs (1x1x1 convs) in f32
        h = jnp.dot(pooled, w1t_ref[...], preferred_element_type=jnp.float32) + b1_ref[...]
        h = _act(h, relu_act)
        s = jnp.dot(h, w2t_ref[...], preferred_element_type=jnp.float32) + b2_ref[...]
        s = jax.nn.sigmoid(s)                                                    # (NB, C)
        # excite: multiply in the input's native dtype, broadcast over lanes (S)
        o_ref[...] = x * s[:, :, None].astype(o_ref.dtype)
    return kernel


# --------------------------------------------------------------------------------------
# Path B, pass 1: pooled-sum over S tiles + channel gate -> per-sample scale (N, C, 1).
# --------------------------------------------------------------------------------------
def _se_pool_gate_kernel(relu_act, inv_s, s_total, ts, needs_mask):
    def kernel(x_ref, w1_ref, b1_ref, w2_ref, b2_ref, scale_ref, acc_ref):
        t = pl.program_id(1)

        @pl.when(t == 0)
        def _init():
            acc_ref[...] = jnp.zeros_like(acc_ref)

        x = x_ref[0]                                                             # (C, TS)
        if needs_mask:  # zero out-of-range lanes on the (possibly partial) last tile
            lane = jax.lax.broadcasted_iota(jnp.int32, x.shape, 1)
            x = jnp.where(t * ts + lane < s_total, x, jnp.zeros_like(x))
        acc_ref[...] += jnp.sum(x, axis=-1, keepdims=True, dtype=jnp.float32)    # (C, 1)

        @pl.when(t == pl.num_programs(1) - 1)
        def _finalize():
            pooled = acc_ref[...] * inv_s                                        # (C, 1)
            h = jnp.dot(w1_ref[...], pooled, preferred_element_type=jnp.float32) + b1_ref[...]
            h = _act(h, relu_act)
            s = jnp.dot(w2_ref[...], h, preferred_element_type=jnp.float32) + b2_ref[...]
            scale_ref[0] = jax.nn.sigmoid(s)                                     # (C, 1)
    return kernel


# --------------------------------------------------------------------------------------
# Path B, pass 2: fully parallel excite.
# --------------------------------------------------------------------------------------
def _se_scale_kernel(x_ref, scale_ref, o_ref):
    o_ref[0] = x_ref[0] * scale_ref[0].astype(o_ref.dtype)                       # (C,TS)*(C,1)


# --------------------------------------------------------------------------------------
# Wrapper.
# --------------------------------------------------------------------------------------
_PACK_BYTES = 4 << 20        # target packed-block size when samples are small (~86% roofline)
_FUSED_MAX_SAMPLE = 8 << 20  # above this per-sample size, use the S-tiled two-pass path
_TILE_BYTES = 2 << 20        # ~2 MiB x tile for the tiled path


def _vmem_limit(buffer_bytes):
    # pipeline buffers (already including double-buffering) + slack, clamped to a range
    # that is safe on v5e/v6e (128 MiB physical) and v7x (64 MiB physical).
    return int(min(max(buffer_bytes + (2 << 20), 24 << 20), 48 << 20))


def se_forward(x, w1, b1, w2, b2, relu_act=True, *, force_tiled=False, tile_s=None):
    """x: (N, C, T, H, W). w1: (F, C), b1: (F,), w2: (C, F), b2: (C,). Weights f32."""
    N, C, T, H, W = x.shape
    F = w1.shape[0]
    S = T * H * W
    itemsize = jnp.dtype(x.dtype).itemsize
    x_flat = x.reshape(N, C, S)
    inv_s = 1.0 / S

    sample_bytes = C * S * itemsize
    wbytes = int((w1.size + w2.size + b1.size + b2.size) * 4)
    use_fused = (not force_tiled) and (sample_bytes <= _FUSED_MAX_SAMPLE)

    if use_fused:
        # pack multiple samples per grid step when samples are small (amortize step overhead)
        nb = 1
        for d in range(1, N + 1):
            if N % d == 0 and d * sample_bytes <= max(_PACK_BYTES, sample_bytes):
                nb = d
        block_bytes = nb * sample_bytes

        out_flat = pl.pallas_call(
            _se_fused_kernel(relu_act, inv_s),
            out_shape=jax.ShapeDtypeStruct((N, C, S), x.dtype),
            grid_spec=pltpu.PrefetchScalarGridSpec(
                num_scalar_prefetch=0,
                grid=(N // nb,),
                in_specs=[
                    pl.BlockSpec((nb, C, S), lambda n: (n, 0, 0)),   # x
                    pl.BlockSpec((C, F), lambda n: (0, 0)),          # w1^T
                    pl.BlockSpec((1, F), lambda n: (0, 0)),          # b1
                    pl.BlockSpec((F, C), lambda n: (0, 0)),          # w2^T
                    pl.BlockSpec((1, C), lambda n: (0, 0)),          # b2
                ],
                out_specs=pl.BlockSpec((nb, C, S), lambda n: (n, 0, 0)),
            ),
            compiler_params=pltpu.CompilerParams(
                dimension_semantics=("parallel",),
                vmem_limit_bytes=_vmem_limit(4 * block_bytes + 2 * wbytes),
            ),
        )(x_flat, w1.T, b1.reshape(1, F), w2.T, b2.reshape(1, C))
        return out_flat.reshape(N, C, T, H, W)

    # ---------------- Path B: S-tiled two-pass fallback (large T*H*W) -----------------
    if tile_s is None:
        ts = max(128, (_TILE_BYTES // (C * itemsize)) // 128 * 128)
        ts = min(ts, pl.cdiv(S, 128) * 128)
    else:
        assert tile_s % 128 == 0, "tile_s must be a multiple of 128"
        ts = tile_s
    n_tiles = pl.cdiv(S, ts)
    needs_mask = (S % ts) != 0
    tile_bytes = C * ts * itemsize

    # pass 1: pooled sum + gate -> per-sample channel scale (N, C, 1) f32
    scale = pl.pallas_call(
        _se_pool_gate_kernel(relu_act, inv_s, S, ts, needs_mask),
        out_shape=jax.ShapeDtypeStruct((N, C, 1), jnp.float32),
        grid_spec=pltpu.PrefetchScalarGridSpec(
            num_scalar_prefetch=0,
            grid=(N, n_tiles),
            in_specs=[
                pl.BlockSpec((1, C, ts), lambda n, t: (n, 0, t)),    # x tile
                pl.BlockSpec((F, C), lambda n, t: (0, 0)),           # w1
                pl.BlockSpec((F, 1), lambda n, t: (0, 0)),           # b1
                pl.BlockSpec((C, F), lambda n, t: (0, 0)),           # w2
                pl.BlockSpec((C, 1), lambda n, t: (0, 0)),           # b2
            ],
            out_specs=pl.BlockSpec((1, C, 1), lambda n, t: (n, 0, 0)),
            scratch_shapes=[pltpu.VMEM((C, 1), jnp.float32)],
        ),
        compiler_params=pltpu.CompilerParams(
            dimension_semantics=("parallel", "arbitrary"),
            vmem_limit_bytes=_vmem_limit(2 * tile_bytes + 2 * wbytes),
        ),
    )(x_flat, w1, b1.reshape(F, 1), w2, b2.reshape(C, 1))

    # pass 2: excite, fully parallel over samples and spatial tiles
    out_flat = pl.pallas_call(
        _se_scale_kernel,
        out_shape=jax.ShapeDtypeStruct((N, C, S), x.dtype),
        grid_spec=pltpu.PrefetchScalarGridSpec(
            num_scalar_prefetch=0,
            grid=(N, n_tiles),
            in_specs=[
                pl.BlockSpec((1, C, ts), lambda n, t: (n, 0, t)),    # x tile
                pl.BlockSpec((1, C, 1), lambda n, t: (n, 0, 0)),     # scale
            ],
            out_specs=pl.BlockSpec((1, C, ts), lambda n, t: (n, 0, t)),
        ),
        compiler_params=pltpu.CompilerParams(
            dimension_semantics=("parallel", "parallel"),
            vmem_limit_bytes=_vmem_limit(4 * tile_bytes),
        ),
    )(x_flat, scale)
    return out_flat.reshape(N, C, T, H, W)


# --------------------------------------------------------------------------------------
# Pure-JAX reference matching the PyTorch module.
# --------------------------------------------------------------------------------------
def se_reference(x, w1, b1, w2, b2, relu_act=True):
    pooled = jnp.mean(x, axis=(2, 3, 4))                       # (N, C)
    h = pooled @ w1.T + b1                                     # (N, F)
    h = jnp.maximum(h, 0.0) if relu_act else h * jax.nn.sigmoid(h)
    s = jax.nn.sigmoid(h @ w2.T + b2)                          # (N, C)
    return x * s[:, :, None, None, None]


if __name__ == "__main__":
    # SE(dim_in=16, ratio=0.25) -> dim_fc = _round_width(16, 0.25) = 8
    N, C, T, H, W = 2, 16, 4, 8, 8
    ratio = 0.25
    F = _round_width(C, ratio)

    key = jax.random.PRNGKey(0)
    kx, k1, k2, k3, k4 = jax.random.split(key, 5)

    x = jax.random.normal(kx, (N, C, T, H, W), dtype=jnp.float32)
    # Conv3d(C, F, 1) weights (F, C, 1, 1, 1) -> (F, C); likewise fc2.
    w1 = jax.random.normal(k1, (F, C), dtype=jnp.float32) * (1.0 / math.sqrt(C))
    b1 = jax.random.normal(k2, (F,), dtype=jnp.float32) * 0.1
    w2 = jax.random.normal(k3, (C, F), dtype=jnp.float32) * (1.0 / math.sqrt(F))
    b2 = jax.random.normal(k4, (C,), dtype=jnp.float32) * 0.1

    # 1) fused path, ReLU gate
    out = jax.block_until_ready(se_forward(x, w1, b1, w2, b2, relu_act=True))
    ref = se_reference(x, w1, b1, w2, b2, relu_act=True)
    assert out.shape == x.shape
    assert jnp.allclose(out, ref, atol=1e-5, rtol=1e-5), "fused/relu mismatch"

    # 2) fused path, Swish gate
    out_sw = jax.block_until_ready(se_forward(x, w1, b1, w2, b2, relu_act=False))
    ref_sw = se_reference(x, w1, b1, w2, b2, relu_act=False)
    assert jnp.allclose(out_sw, ref_sw, atol=1e-5, rtol=1e-5), "fused/swish mismatch"

    # 3) S-tiled two-pass fallback (forced; non-divisible S exercises masking + accumulation)
    x3 = jax.random.normal(kx, (N, C, 3, 10, 10), dtype=jnp.float32)
    out_t = jax.block_until_ready(
        se_forward(x3, w1, b1, w2, b2, relu_act=True, force_tiled=True, tile_s=128))
    ref_t = se_reference(x3, w1, b1, w2, b2, relu_act=True)
    assert jnp.allclose(out_t, ref_t, atol=1e-5, rtol=1e-5), "tiled mismatch"

    # 4) bf16 activations (f32 pooled accumulation inside the kernel)
    x_bf = x.astype(jnp.bfloat16)
    out_bf = jax.block_until_ready(se_forward(x_bf, w1, b1, w2, b2, relu_act=True))
    ref_bf = se_reference(x_bf.astype(jnp.float32), w1, b1, w2, b2, relu_act=True)
    assert out_bf.dtype == jnp.bfloat16
    assert jnp.allclose(out_bf.astype(jnp.float32), ref_bf, atol=5e-2, rtol=5e-2), "bf16 mismatch"

    print("KERNEL_OK")
</pallas_src>

<mosaic_0001>
module attributes {stable_mosaic.version = 11 : i64} {
  func.func @kernel(%arg0: i32, %arg1: memref<2x16x256xf32, #tpu.memory_space<vmem>>, %arg2: memref<16x8xf32, #tpu.memory_space<vmem>>, %arg3: memref<1x8xf32, #tpu.memory_space<vmem>>, %arg4: memref<8x16xf32, #tpu.memory_space<vmem>>, %arg5: memref<1x16xf32, #tpu.memory_space<vmem>>, %arg6: memref<2x16x256xf32, #tpu.memory_space<vmem>>) attributes {dimension_semantics = [#tpu.dimension_semantics<parallel>], iteration_bounds = array<i64: 1>, scalar_prefetch = 0 : i64, scratch_operands = 0 : i64, tpu.core_type = #tpu.core_type<tc>, window_params = [{transform_indices = @transform_0, window_bounds = array<i64: 2, 16, 256>}, {pipeline_mode = #tpu.pipeline_mode<synchronous>, transform_indices = @transform_1, window_bounds = array<i64: 16, 8>}, {pipeline_mode = #tpu.pipeline_mode<synchronous>, transform_indices = @transform_2, window_bounds = array<i64: 1, 8>}, {pipeline_mode = #tpu.pipeline_mode<synchronous>, transform_indices = @transform_3, window_bounds = array<i64: 8, 16>}, {pipeline_mode = #tpu.pipeline_mode<synchronous>, transform_indices = @transform_4, window_bounds = array<i64: 1, 16>}, {transform_indices = @transform_5, window_bounds = array<i64: 2, 16, 256>}]} {
    %c0 = arith.constant 0 : index
    %c0_0 = arith.constant 0 : index
    %c0_1 = arith.constant 0 : index
    %0 = vector.load %arg1[%c0, %c0_0, %c0_1] : memref<2x16x256xf32, #tpu.memory_space<vmem>>, vector<2x16x256xf32>
    %cst = arith.constant dense<0.000000e+00> : vector<2x16xf32>
    %1 = vector.multi_reduction <add>, %0, %cst [2] : vector<2x16x256xf32> to vector<2x16xf32>
    %cst_2 = arith.constant 3.906250e-03 : f32
    %2 = vector.broadcast %cst_2 : f32 to vector<2x16xf32>
    %3 = arith.mulf %1, %2 : vector<2x16xf32>
    %c0_3 = arith.constant 0 : index
    %c0_4 = arith.constant 0 : index
    %4 = vector.load %arg2[%c0_3, %c0_4] : memref<16x8xf32, #tpu.memory_space<vmem>>, vector<16x8xf32>
    %cst_5 = arith.constant dense<0.000000e+00> : vector<2x8xf32>
    %5 = tpu.matmul %3, %4, %cst_5 {dimension_numbers = #tpu.dot_dimension_numbers<[1], [0], [0], [1], [0, 0, 1, 1], [], []>} : vector<2x16xf32>, vector<16x8xf32>, vector<2x8xf32> -> vector<2x8xf32>
    %c0_6 = arith.constant 0 : index
    %c0_7 = arith.constant 0 : index
    %6 = vector.load %arg3[%c0_6, %c0_7] : memref<1x8xf32, #tpu.memory_space<vmem>>, vector<1x8xf32>
    %7 = vector.broadcast %6 : vector<1x8xf32> to vector<2x8xf32>
    %8 = arith.addf %5, %7 : vector<2x8xf32>
    %cst_8 = arith.constant 0.000000e+00 : f32
    %9 = vector.broadcast %cst_8 : f32 to vector<2x8xf32>
    %10 = arith.maximumf %8, %9 : vector<2x8xf32>
    %c0_9 = arith.constant 0 : index
    %c0_10 = arith.constant 0 : index
    %11 = vector.load %arg4[%c0_9, %c0_10] : memref<8x16xf32, #tpu.memory_space<vmem>>, vector<8x16xf32>
    %cst_11 = arith.constant dense<0.000000e+00> : vector<2x16xf32>
    %12 = tpu.matmul %10, %11, %cst_11 {dimension_numbers = #tpu.dot_dimension_numbers<[1], [0], [0], [1], [0, 0, 1, 1], [], []>} : vector<2x8xf32>, vector<8x16xf32>, vector<2x16xf32> -> vector<2x16xf32>
    %c0_12 = arith.constant 0 : index
    %c0_13 = arith.constant 0 : index
    %13 = vector.load %arg5[%c0_12, %c0_13] : memref<1x16xf32, #tpu.memory_space<vmem>>, vector<1x16xf32>
    %14 = vector.broadcast %13 : vector<1x16xf32> to vector<2x16xf32>
    %15 = arith.addf %12, %14 : vector<2x16xf32>
    %16 = arith.negf %15 : vector<2x16xf32>
    %17 = math.exp %16 : vector<2x16xf32>
    %cst_14 = arith.constant 1.000000e+00 : f32
    %18 = vector.broadcast %cst_14 : f32 to vector<2x16xf32>
    %19 = arith.addf %18, %17 : vector<2x16xf32>
    %20 = arith.divf %18, %19 : vector<2x16xf32>
    %21 = vector.shape_cast %20 : vector<2x16xf32> to vector<2x16x1xf32>
    %22 = vector.broadcast %21 : vector<2x16x1xf32> to vector<2x16x256xf32>
    %23 = arith.mulf %0, %22 : vector<2x16x256xf32>
    %c0_15 = arith.constant 0 : index
    %c0_16 = arith.constant 0 : index
    %c0_17 = arith.constant 0 : index
    %24 = vector.load %arg6[%c0_15, %c0_16, %c0_17] : memref<2x16x256xf32, #tpu.memory_space<vmem>>, vector<2x16x256xf32>
    tpu.vector_store %arg6[%c0_15, %c0_16, %c0_17], %23 {strides = array<i32>} : memref<2x16x256xf32, #tpu.memory_space<vmem>>, vector<2x16x256xf32>,
    return
  }
  func.func @transform_0(%arg0: i32) -> (i32, i32, i32) {
    %c0_i32 = arith.constant 0 : i32
    %c0_i32_0 = arith.constant 0 : i32
    %c0_i32_1 = arith.constant 0 : i32
    return %arg0, %c0_i32, %c0_i32_0 : i32, i32, i32
  }
  func.func @transform_1(%arg0: i32) -> (i32, i32) {
    %c0_i32 = arith.constant 0 : i32
    %c0_i32_0 = arith.constant 0 : i32
    %c0_i32_1 = arith.constant 0 : i32
    return %c0_i32, %c0_i32_0 : i32, i32
  }
  func.func @transform_2(%arg0: i32) -> (i32, i32) {
    %c0_i32 = arith.constant 0 : i32
    %c0_i32_0 = arith.constant 0 : i32
    %c0_i32_1 = arith.constant 0 : i32
    return %c0_i32, %c0_i32_0 : i32, i32
  }
  func.func @transform_3(%arg0: i32) -> (i32, i32) {
    %c0_i32 = arith.constant 0 : i32
    %c0_i32_0 = arith.constant 0 : i32
    %c0_i32_1 = arith.constant 0 : i32
    return %c0_i32, %c0_i32_0 : i32, i32
  }
  func.func @transform_4(%arg0: i32) -> (i32, i32) {
    %c0_i32 = arith.constant 0 : i32
    %c0_i32_0 = arith.constant 0 : i32
    %c0_i32_1 = arith.constant 0 : i32
    return %c0_i32, %c0_i32_0 : i32, i32
  }
  func.func @transform_5(%arg0: i32) -> (i32, i32, i32) {
    %c0_i32 = arith.constant 0 : i32
    %c0_i32_0 = arith.constant 0 : i32
    %c0_i32_1 = arith.constant 0 : i32
    return %arg0, %c0_i32, %c0_i32_0 : i32, i32, i32
  }
}

</mosaic_0001>

<bundles_post_ra>
// kernel: tpu_custom_call.1
= control target key start
LH: loop header
LB: loop body
LE: loop exit
PB: predicated region body
PF: predicated region fallthrough
CT: control target
= control target key end

     0   :  { %10 = vsyncpa [#allocation3], 0  ;;  %s511_s0 = inlined_call_operand.hbm [shape: f32[2,16,256], index: 0, kind: input, shape index: {}]   ;;  %s512_s1 = inlined_call_operand.vmem [shape: f32[16,8], index: 1, kind: input, shape index: {}]   ;;  %s513_s2 = inlined_call_operand.vmem [shape: f32[1,8], index: 2, kind: input, shape index: {}]   ;;  %s514_s3 = inlined_call_operand.vmem [shape: f32[8,16], index: 3, kind: input, shape index: {}]   ;;  %s515_s4 = inlined_call_operand.vmem [shape: f32[1,16], index: 4, kind: input, shape index: {}]   ;;  %s516_s5 = inlined_call_operand.hbm [shape: f32[2,16,256], index: 5, kind: output, shape index: {}]  }
   0x1   :  { %11 = vsyncpa [#allocation4], 0  ;;  %s397_s18 = smov [#allocation2]   ;;  %s349_s22 = scalar_lea.hbm %s511_s0, 1024 }
   0x2   :  { %s17_s19 = sshll.u32 %s397_s18, 4  ;;  %p350_p0 = scmp.ne.s32.totalorder %s511_s0, %s349_s22  ;;  %s18_s19 = int_to_ptr.vmem [resolvable:$true] %s17_s19 }
   0x3   :  { %p353_p1 = scmp.lt.u32.totalorder %s349_s22, %s511_s0 }
   0x5   :  { %p355_p2 = pnand %p353_p1, %p350_p0 }
   0x7   :  { %358 = shalt.err (!%p355_p2)
}
   0x8   :  { %s359_s27 = scalar_lea.vmem %s18_s19, 1024  ;;  %p364_p4 = scmp.lt.s32.totalorder %s18_s19, %s18_s19 }
   0x9   :  { %p360_p3 = scmp.ne.s32.totalorder %s18_s19, %s359_s27  ;;  %p365_p5 = scmp.lt.s32.totalorder %s359_s27, %s359_s27 }
   0xb   :  { %p366_p6 = por %p365_p5, %p364_p4 }
   0xd   :  { %p367_p7 = pnand %p366_p6, %p360_p3 }
   0xf   :  { %370 = shalt.err (!%p367_p7)
}
  0x10   :  { %s398_s28 = smov 256   ;;  %s399_s29 = smov 16  }
  0x11   :  { %23 = dma.hbm_to_vmem [thread:$0]  %s511_s0, 1024, %s18_s19, [#allocation3], %s398_s28, %s398_s28, %s399_s29  }
  0x12   :  { %393 = dma.done.wait [#allocation3], 1024  }
  0x13   :  { %394 = vsyncadd [#allocation3], 4294966272  ;;  %v449_v0 = vld [vmem:[#allocation2 + $0x20] sm:$0xff]  ;;  %v451_v1 = vld [vmem:[#allocation2 + $0x28] sm:$0xff]  ;;  %v400_v15 = vmov 0.0|0.0   ;;  %vm401_vm0 = vmmov 0   ;;  %v72_v17 = vlaneseq }
  0x14   :  { %v453_v2 = vld [vmem:[#allocation2] sm:$0xff]  ;;  %v49_v3 = vadd.f32 %v451_v1, %v449_v0  ;;  %v457_v4 = vld [vmem:[#allocation2 + $0x8] sm:$0xff]  ;;  %v459_v5 = vld [vmem:[#allocation2 + $0x30] sm:$0xff]  ;;  %335 = vmatprep.subr.bf16.mxu0 %v400_v15  ;;  %v402_v16 = vmov 0.0   ;;  %vm83_vm1 = vcmask 130112   ;;  %vm94_vm2 = vcmask 1041409  }
  0x15   :  { %v461_v6 = vld [vmem:[#allocation2 + $0x38] sm:$0xff]  ;;  %v43_v7 = vadd.f32 %v457_v4, %v453_v2  ;;  %v465_v8 = vld [vmem:[#allocation2 + $0x10] sm:$0xff]  ;;  %v59_v12 = vld [vmem:[%s512_s1] sm:$0xff]  ;;  %327 = vmatprep.mubr.msk.f32.mxu0 %vm401_vm0, %v402_v16  ;;  %330 = vmatprep.subr.mxu1 %v402_v16  ;;  %v73_v18 = vand.u32 127, %v72_v17  ;;  %v75_v19 = vshrl.u32 %v72_v17, 7  ;;  %vm96_vm3 = vcmask 130048  }
  0x16   :  { %v467_v9 = vld [vmem:[#allocation2 + $0x18] sm:$0xff]  ;;  %50 = vadd.xlane.f32.xlu1 %v49_v3  ;;  %v52_v10 = vadd.f32 %v461_v6, %v459_v5  ;;  %v60_v13 = vld [vmem:[%s512_s1 + $0x8] sm:$0xff]  ;;  %332 = vmatprep.mubr.msk.f32.mxu1 %vm401_vm0, %v402_v16  ;;  %v170_v38 = vld [vmem:[%s514_s3] sm:$0xff]  ;;  %vm178_vm4 = vcmask 64512  }
  0x17   :  { %44 = vadd.xlane.f32.xlu0 %v43_v7  ;;  %v46_v11 = vadd.f32 %v467_v9, %v465_v8  ;;  %v336_v14 = vpack.c.bf16 %v60_v13, %v59_v12  ;;  %v78_v20 = vadd.s32 4294967288, %v73_v18  ;;  %v76_v23 = vsub.s32 %v73_v18, %v75_v19  ;;  %331 = vmatpush3.msra.mxu1 %v170_v38  ;;  %v313_v39 = vld [vmem:[%s513_s2] ss:$0 sm:$0xff]  ;;  %s403_s2 = smov [#allocation5]  }
  0x18   :  { %v315_v44 = vld [vmem:[%s515_s4] ss:$0 sm:$0xff]  ;;  %v260_v51 = vsub.s32 0, %v75_v19  ;;  %v271_v54 = vsub.s32 1, %v75_v19  ;;  %s301_s3 = sshll.u32 %s403_s2, 4  ;;  %s302_s3 = int_to_ptr.vmem [resolvable:$true] %s301_s3 }
  0x19   :  { %337 = vmatpush3.bf16.msra.mxu0 %v336_v14  ;;  %v81_v25 = vsub.s32 %v78_v20, %v75_v19  ;;  %s371_s4 = scalar_lea.vmem %s302_s3, 1024  ;;  %p376_p9 = scmp.lt.s32.totalorder %s302_s3, %s302_s3 }
  0x1a   :  { %53 = vadd.xlane.f32.xlu1 %v52_v10  ;;  %p372_p8 = scmp.ne.s32.totalorder %s302_s3, %s371_s4  ;;  %p377_p10 = scmp.lt.s32.totalorder %s371_s4, %s371_s4 }
  0x1b   :  { %47 = vadd.xlane.f32.xlu0 %v46_v11 }
  0x1c   :  { %p378_p11 = por %p377_p10, %p376_p9 }
  0x1e   :  { %p379_p12 = pnand %p378_p11, %p372_p8 }
  0xa3   :  { %v51_v21 = vpop.xlane.xlu1 %50 }
  0xa4   :  { %v45_v22 = vpop.xlane.xlu0 %44  ;;  %v57_v24 = vmul.f32 0.00390625, %v51_v21 }
  0xa5   :  { %v55_v26 = vmul.f32 0.00390625, %v45_v22 }
  0xa6   :  { %v88_v31 = vrot.slane %v57_v24, %v76_v23 }
  0xa7   :  { %v54_v27 = vpop.xlane.xlu1 %53  ;;  %v77_v33 = vrot.slane %v55_v26, %v76_v23 }
  0xa8   :  { %v58_v28 = vmul.f32 0.00390625, %v54_v27  ;;  %v48_v29 = vpop.xlane.xlu0 %47 }
  0xa9   :  { %v56_v30 = vmul.f32 0.00390625, %v48_v29 }
  0xaa   :  { %v92_v32 = vrot.slane %v58_v28, %v81_v25 }
  0xab   :  { %v82_v34 = vrot.slane %v56_v30, %v81_v25 }
  0xac   :  { %v93_v35 = vsel %vm83_vm1, %v92_v32, %v88_v31 }
  0xad   :  { %v84_v36 = vsel %vm83_vm1, %v82_v34, %v77_v33 }
  0xae   :  { %v95_v37 = vsel %vm94_vm2, %v93_v35, %v84_v36 }
  0xaf   :  { %328 = vmatmul.mubr.msk.f32.vlgmr.msra.gmra.mrb[0].mxu0 %vm96_vm3, %v95_v37 }
 0x182   :  { %v165_v40 = vpop.f32.mrb[0].mxu0 }
 0x183   :  { %v166_v41 = vadd.f32 %v313_v39, %v165_v40  ;;  %v329_v42 = vpop.f32.mrb[1].mxu0 }
 0x185   :  { %v169_v43 = vmax.f32 %v166_v41, 0.0 }
 0x187   :  { %333 = vmatmul.mubr.msk.f32.vlgmr.msra.gmra.mrb[0].mxu1 %vm178_vm4, %v169_v43 }
 0x25a   :  { %v248_v45 = vpop.f32.mrb[0].mxu1 }
 0x25b   :  { %v249_v46 = vadd.f32 %v315_v44, %v248_v45  ;;  %v334_v47 = vpop.f32.mrb[1].mxu1 }
 0x25d   :  { %v317_v48 = vmul.f32 -1.442695, %v249_v46 }
 0x25f   :  { %345 = vpow2.f32 %v317_v48 }
 0x269   :  { %v346_v49 = vpop.eup %345 }
 0x26a   :  { %v255_v50 = vadd.f32 1.0, %v346_v49 }
 0x26c   :  { %347 = vrcp.f32 %v255_v50 }
 0x276   :  { %v348_v52 = vpop.eup %347 }
 0x277   :  { %v261_v53 = vrot.slane %v348_v52, %v260_v51  ;;  %v272_v55 = vrot.slane %v348_v52, %v271_v54 }
 0x279   :  { %267 = vbcast.lane.b32.xlu1 %v261_v53, 264  ;;  %263 = vbcast.lane.b32.xlu0 %v261_v53, 256 }
 0x27d   :  { %274 = vbcast.lane.b32.xlu1 %v272_v55, 256 }
 0x281   :  { %278 = vbcast.lane.b32.xlu1 %v272_v55, 264 }
 0x2eb   :  { %v268_v56 = vpop.permute.xlu1 %267  ;;  %v264_v57 = vpop.permute.xlu0 %263 }
 0x2ec   :  { %v282_v58 = vmul.f32 %v268_v56, %v465_v8  ;;  %v283_v59 = vmul.f32 %v268_v56, %v467_v9  ;;  %v280_v60 = vmul.f32 %v264_v57, %v453_v2  ;;  %v281_v61 = vmul.f32 %v264_v57, %v457_v4 }
 0x2ee   :  { %290 = vst [vmem:[#allocation5 + $0x10] sm:$0xff] %v282_v58  ;;  %291 = vst [vmem:[#allocation5 + $0x18] sm:$0xff] %v283_v59 }
 0x2ef   :  { %288 = vst [vmem:[#allocation5] sm:$0xff] %v280_v60  ;;  %289 = vst [vmem:[#allocation5 + $0x8] sm:$0xff] %v281_v61  ;;  %v275_v62 = vpop.permute.xlu1 %274 }
 0x2f0   :  { %v284_v63 = vmul.f32 %v275_v62, %v449_v0  ;;  %v285_v3 = vmul.f32 %v275_v62, %v451_v1 }
 0x2f2   :  { %292 = vst [vmem:[#allocation5 + $0x20] sm:$0xff] %v284_v63  ;;  %293 = vst [vmem:[#allocation5 + $0x28] sm:$0xff] %v285_v3 }
 0x2f3   :  { %v279_v7 = vpop.permute.xlu1 %278 }
 0x2f4   :  { %v286_v8 = vmul.f32 %v279_v7, %v459_v5  ;;  %v287_v2 = vmul.f32 %v279_v7, %v461_v6 }
 0x2f6   :  { %294 = vst [vmem:[#allocation5 + $0x30] sm:$0xff] %v286_v8  ;;  %295 = vst [vmem:[#allocation5 + $0x38] sm:$0xff] %v287_v2 }
 0x2f7   :  { %382 = shalt.err (!%p379_p12)
}
 0x2f8   :  { %s383_s17 = scalar_lea.hbm %s516_s5, 1024 }
 0x2f9   :  { %p384_p13 = scmp.ne.s32.totalorder %s516_s5, %s383_s17  ;;  %p387_p0 = scmp.lt.u32.totalorder %s383_s17, %s516_s5 }
 0x2fb   :  { %p389_p1 = pnand %p387_p0, %p384_p13 }
 0x2fd   :  { %392 = shalt.err (!%p389_p1)
}
 0x2fe   :  { %307 = dma.vmem_to_hbm [thread:$0]  %s302_s3, 1024, %s516_s5, [#allocation4], %s398_s28, %s398_s28, %s399_s29  }
 0x2ff   :  { %395 = dma.done.wait [#allocation4], 1024  }
 0x300   :  { %396 = vsyncadd [#allocation4], 4294966272 }
 0x301   :  { %311 = vsyncpa [#allocation3], 1 }
 0x302   :  { %312 = vsyncpa [#allocation4], 1 }

</bundles_post_ra>
